<compile_context>
chip_gen: v7x
topology: tpu7x:2x2x1
jax: 0.10.0
libtpu: 0.0.40
codegen_flags: <defaults>
</compile_context>

<pallas_src>
import functools

import jax
import jax.numpy as jnp
from jax import lax
from jax.experimental import pallas as pl
from jax.experimental.pallas import tpu as pltpu


def _cross_attn_kernel(y_ref, x_ref, wq_ref, wkv_ref, wu_ref, bu_ref, mask_ref,
                       o_ref, *, heads, emb, self_mask):
    """One batch element: fused projections, per-head softmax attention, and a
    single wide unify-heads matmul."""
    he = heads * emb

    yb = y_ref[0]                        # (Ty, E)
    xb = x_ref[0]                        # (Tx, E)

    # Wide projections (scale factors pre-folded into the weight slabs).
    q_all = jnp.dot(yb, wq_ref[...], preferred_element_type=jnp.float32)    # (Ty, H*E)
    kv_all = jnp.dot(xb, wkv_ref[...], preferred_element_type=jnp.float32)  # (Tx, 2*H*E)
    k_all = kv_all[:, :he]
    v_all = kv_all[:, he:]

    mask0 = mask_ref[...] == 0           # (Ty, Tx)
    if self_mask:
        ty, tx = mask0.shape
        row = lax.broadcasted_iota(jnp.int32, (ty, tx), 0)
        col = lax.broadcasted_iota(jnp.int32, (ty, tx), 1)
        causal = col > row
    else:
        causal = None

    head_outs = []
    for h in range(heads):               # static unroll over heads (H small)
        qh = q_all[:, h * emb:(h + 1) * emb]   # (Ty, E)
        kh = k_all[:, h * emb:(h + 1) * emb]   # (Tx, E)
        vh = v_all[:, h * emb:(h + 1) * emb]   # (Tx, E)

        # Contract the E axis of q and k directly (avoids an XLU transpose of k).
        logits = lax.dot_general(
            qh, kh, dimension_numbers=(((1,), (1,)), ((), ())),
            preferred_element_type=jnp.float32)                # (Ty, Tx)

        if causal is not None:
            # TODO(synk): torch uses -inf here; a large finite value avoids NaN
            # when a row is fully masked, numerically identical otherwise.
            logits = jnp.where(causal, jnp.float32(-1e30), logits)
        logits = jnp.where(mask0, jnp.float32(-1e9), logits)   # masked_fill(mask==0, -1e9)

        # softmax over keys
        m = jnp.max(logits, axis=-1, keepdims=True)
        p = jnp.exp(logits - m)
        attn = p * pl.reciprocal(jnp.sum(p, axis=-1, keepdims=True), approx=False)

        head_outs.append(jnp.dot(attn, vh, preferred_element_type=jnp.float32))  # (Ty, E)

    out_all = jnp.concatenate(head_outs, axis=-1)               # (Ty, H*E), head-major
    o_ref[0] = (jnp.dot(out_all, wu_ref[...], preferred_element_type=jnp.float32)
                + bu_ref[...]).astype(o_ref.dtype)


def cross_attention(x, y, mask, w_keys, w_queries, w_values, w_unify, b_unify,
                    *, heads, self_mask=False):
    """Pallas implementation of CrossAttention.forward(x, y, mask).

    w_keys / w_queries / w_values : (H*E, E)  (torch nn.Linear weight layout)
    w_unify                       : (E, H*E)
    b_unify                       : (E,)
    """
    b, x_t, e = x.shape
    _, y_t, y_e = y.shape
    h = heads
    he = h * e

    q_scale = 1.0 / (float(y_e) ** 0.25)
    k_scale = 1.0 / (float(x.shape[2]) ** 0.25)

    # nn.Linear computes x @ W.T; column h*E+j of the result is head h, emb j,
    # matching the torch .view(b, t, h, e) split. Fold the softmax scales in.
    wq = w_queries.T * jnp.float32(q_scale)                 # (E, H*E)
    wk = w_keys.T * jnp.float32(k_scale)                    # (E, H*E)
    wv = w_values.T                                         # (E, H*E)
    wkv = jnp.concatenate([wk, wv], axis=1)                 # (E, 2*H*E)
    wu = w_unify.T                                          # (H*E, E)
    bu = b_unify.reshape(1, e)

    kernel = functools.partial(_cross_attn_kernel, heads=h, emb=e,
                               self_mask=self_mask)

    return pl.pallas_call(
        kernel,
        out_shape=jax.ShapeDtypeStruct((b, y_t, e), jnp.float32),
        grid_spec=pltpu.PrefetchScalarGridSpec(
            num_scalar_prefetch=0,
            grid=(b,),
            in_specs=[
                pl.BlockSpec((1, y_t, e), lambda bi: (bi, 0, 0)),    # y
                pl.BlockSpec((1, x_t, e), lambda bi: (bi, 0, 0)),    # x
                pl.BlockSpec((e, he), lambda bi: (0, 0)),            # Wq (scaled)
                pl.BlockSpec((e, 2 * he), lambda bi: (0, 0)),        # [Wk | Wv]
                pl.BlockSpec((he, e), lambda bi: (0, 0)),            # W_unify^T
                pl.BlockSpec((1, e), lambda bi: (0, 0)),             # unify bias
                pl.BlockSpec((y_t, x_t), lambda bi: (0, 0)),         # mask
            ],
            out_specs=pl.BlockSpec((1, y_t, e), lambda bi: (bi, 0, 0)),
        ),
        compiler_params=pltpu.CompilerParams(
            dimension_semantics=("parallel",)),   # batch axis splits across TCs on v7x
    )(y, x, wq, wkv, wu, bu, mask)


def cross_attention_ref(x, y, mask, w_keys, w_queries, w_values, w_unify, b_unify,
                        *, heads):
    """Pure-JAX reference mirroring the PyTorch forward (self.mask=False path)."""
    b, x_t, e = x.shape
    _, y_t, y_e = y.shape
    h = heads
    keys = (x @ w_keys.T).reshape(b, x_t, h, e)
    queries = (y @ w_queries.T).reshape(b, y_t, h, e)
    values = (x @ w_values.T).reshape(b, x_t, h, e)
    keys = jnp.transpose(keys, (0, 2, 1, 3)).reshape(b * h, x_t, e)
    queries = jnp.transpose(queries, (0, 2, 1, 3)).reshape(b * h, y_t, e)
    values = jnp.transpose(values, (0, 2, 1, 3)).reshape(b * h, x_t, e)
    queries = queries / (y_e ** 0.25)
    keys = keys / (e ** 0.25)
    dot = jnp.einsum("bqe,bke->bqk", queries, keys)
    dot = jnp.where(mask[None, :, :] == 0, -1e9, dot)
    dot = jax.nn.softmax(dot, axis=2)
    out = jnp.einsum("bqk,bke->bqe", dot, values).reshape(b, h, y_t, e)
    out = jnp.transpose(out, (0, 2, 1, 3)).reshape(b, y_t, h * e)
    return out @ w_unify.T + b_unify


if __name__ == "__main__":
    # Small shapes consistent with the module: batch=2, Tx=16, Ty=8, emb=32, heads=4
    B, TX, TY, E, H = 2, 16, 8, 32, 4

    key = jax.random.PRNGKey(0)
    kx, ky, kk, kq, kv, ku, kb, km = jax.random.split(key, 8)

    x = jax.random.normal(kx, (B, TX, E), dtype=jnp.float32)
    y = jax.random.normal(ky, (B, TY, E), dtype=jnp.float32)

    # Deterministic parameter init (nn.Linear weight shapes).
    scale = 1.0 / (E ** 0.5)
    w_keys = jax.random.normal(kk, (H * E, E), dtype=jnp.float32) * scale
    w_queries = jax.random.normal(kq, (H * E, E), dtype=jnp.float32) * scale
    w_values = jax.random.normal(kv, (H * E, E), dtype=jnp.float32) * scale
    w_unify = jax.random.normal(ku, (E, H * E), dtype=jnp.float32) * (1.0 / (H * E) ** 0.5)
    b_unify = jax.random.normal(kb, (E,), dtype=jnp.float32) * 0.01

    # Attention mask: 1 = keep, 0 = mask (broadcast over batch*heads, like the
    # torch masked_fill broadcast).
    mask = (jax.random.uniform(km, (TY, TX)) > 0.2).astype(jnp.int32)

    out = cross_attention(x, y, mask, w_keys, w_queries, w_values, w_unify,
                          b_unify, heads=H, self_mask=False)
    out = jax.block_until_ready(out)

    ref = cross_attention_ref(x, y, mask, w_keys, w_queries, w_values, w_unify,
                              b_unify, heads=H)
    assert out.shape == (B, TY, E)
    assert jnp.allclose(out, ref, atol=1e-4, rtol=1e-4), "mismatch vs JAX reference"

    print("KERNEL_OK")
</pallas_src>

<mosaic_0001>
module attributes {stable_mosaic.version = 11 : i64} {
  func.func @_cross_attn_kernel(%arg0: i32, %arg1: memref<1x8x32xf32, #tpu.memory_space<vmem>>, %arg2: memref<1x16x32xf32, #tpu.memory_space<vmem>>, %arg3: memref<32x128xf32, #tpu.memory_space<vmem>>, %arg4: memref<32x256xf32, #tpu.memory_space<vmem>>, %arg5: memref<128x32xf32, #tpu.memory_space<vmem>>, %arg6: memref<1x32xf32, #tpu.memory_space<vmem>>, %arg7: memref<8x16xi32, #tpu.memory_space<vmem>>, %arg8: memref<1x8x32xf32, #tpu.memory_space<vmem>>) attributes {dimension_semantics = [#tpu.dimension_semantics<parallel>], iteration_bounds = array<i64: 2>, scalar_prefetch = 0 : i64, scratch_operands = 0 : i64, tpu.core_type = #tpu.core_type<tc>, window_params = [{transform_indices = @transform_0, window_bounds = array<i64: 1, 8, 32>}, {transform_indices = @transform_1, window_bounds = array<i64: 1, 16, 32>}, {pipeline_mode = #tpu.pipeline_mode<synchronous>, transform_indices = @transform_2, window_bounds = array<i64: 32, 128>}, {pipeline_mode = #tpu.pipeline_mode<synchronous>, transform_indices = @transform_3, window_bounds = array<i64: 32, 256>}, {pipeline_mode = #tpu.pipeline_mode<synchronous>, transform_indices = @transform_4, window_bounds = array<i64: 128, 32>}, {pipeline_mode = #tpu.pipeline_mode<synchronous>, transform_indices = @transform_5, window_bounds = array<i64: 1, 32>}, {pipeline_mode = #tpu.pipeline_mode<synchronous>, transform_indices = @transform_6, window_bounds = array<i64: 8, 16>}, {transform_indices = @transform_7, window_bounds = array<i64: 1, 8, 32>}]} {
    %c0 = arith.constant 0 : index
    %c0_0 = arith.constant 0 : index
    %c0_1 = arith.constant 0 : index
    %0 = vector.load %arg1[%c0, %c0_0, %c0_1] : memref<1x8x32xf32, #tpu.memory_space<vmem>>, vector<1x8x32xf32>
    %1 = vector.shape_cast %0 : vector<1x8x32xf32> to vector<8x32xf32>
    %c0_2 = arith.constant 0 : index
    %c0_3 = arith.constant 0 : index
    %c0_4 = arith.constant 0 : index
    %2 = vector.load %arg2[%c0_2, %c0_3, %c0_4] : memref<1x16x32xf32, #tpu.memory_space<vmem>>, vector<1x16x32xf32>
    %3 = vector.shape_cast %2 : vector<1x16x32xf32> to vector<16x32xf32>
    %c0_5 = arith.constant 0 : index
    %c0_6 = arith.constant 0 : index
    %4 = vector.load %arg3[%c0_5, %c0_6] : memref<32x128xf32, #tpu.memory_space<vmem>>, vector<32x128xf32>
    %cst = arith.constant dense<0.000000e+00> : vector<8x128xf32>
    %5 = tpu.matmul %1, %4, %cst {dimension_numbers = #tpu.dot_dimension_numbers<[1], [0], [0], [1], [0, 0, 1, 1], [], []>} : vector<8x32xf32>, vector<32x128xf32>, vector<8x128xf32> -> vector<8x128xf32>
    %c0_7 = arith.constant 0 : index
    %c0_8 = arith.constant 0 : index
    %6 = vector.load %arg4[%c0_7, %c0_8] : memref<32x256xf32, #tpu.memory_space<vmem>>, vector<32x256xf32>
    %cst_9 = arith.constant dense<0.000000e+00> : vector<16x256xf32>
    %7 = tpu.matmul %3, %6, %cst_9 {dimension_numbers = #tpu.dot_dimension_numbers<[1], [0], [0], [1], [0, 0, 1, 1], [], []>} : vector<16x32xf32>, vector<32x256xf32>, vector<16x256xf32> -> vector<16x256xf32>
    %8 = vector.extract_strided_slice %7 {offsets = [0, 0], sizes = [16, 128], strides = [1, 1]} : vector<16x256xf32> to vector<16x128xf32>
    %9 = vector.extract_strided_slice %7 {offsets = [0, 128], sizes = [16, 128], strides = [1, 1]} : vector<16x256xf32> to vector<16x128xf32>
    %c0_10 = arith.constant 0 : index
    %c0_11 = arith.constant 0 : index
    %10 = vector.load %arg7[%c0_10, %c0_11] : memref<8x16xi32, #tpu.memory_space<vmem>>, vector<8x16xi32>
    %c0_i32 = arith.constant 0 : i32
    %11 = vector.broadcast %c0_i32 : i32 to vector<8x16xi32>
    %12 = arith.cmpi eq, %10, %11 : vector<8x16xi32>
    %13 = vector.extract_strided_slice %5 {offsets = [0, 0], sizes = [8, 32], strides = [1, 1]} : vector<8x128xf32> to vector<8x32xf32>
    %14 = vector.extract_strided_slice %8 {offsets = [0, 0], sizes = [16, 32], strides = [1, 1]} : vector<16x128xf32> to vector<16x32xf32>
    %15 = vector.extract_strided_slice %9 {offsets = [0, 0], sizes = [16, 32], strides = [1, 1]} : vector<16x128xf32> to vector<16x32xf32>
    %cst_12 = arith.constant dense<0.000000e+00> : vector<8x16xf32>
    %16 = tpu.matmul %13, %14, %cst_12 {dimension_numbers = #tpu.dot_dimension_numbers<[1], [1], [0], [0], [0, 0, 1, 0], [], []>} : vector<8x32xf32>, vector<16x32xf32>, vector<8x16xf32> -> vector<8x16xf32>
    %cst_13 = arith.constant -1.000000e+09 : f32
    %17 = vector.broadcast %cst_13 : f32 to vector<8x16xf32>
    %18 = arith.select %12, %17, %16 : vector<8x16xi1>, vector<8x16xf32>
    %cst_14 = arith.constant dense<0xFF800000> : vector<8xf32>
    %19 = vector.multi_reduction <maximumf>, %18, %cst_14 [1] : vector<8x16xf32> to vector<8xf32>
    %20 = vector.shape_cast %19 : vector<8xf32> to vector<8x1xf32>
    %21 = vector.broadcast %20 : vector<8x1xf32> to vector<8x16xf32>
    %22 = arith.subf %18, %21 : vector<8x16xf32>
    %23 = math.exp %22 : vector<8x16xf32>
    %cst_15 = arith.constant dense<0.000000e+00> : vector<8xf32>
    %24 = vector.multi_reduction <add>, %23, %cst_15 [1] : vector<8x16xf32> to vector<8xf32>
    %25 = vector.shape_cast %24 : vector<8xf32> to vector<8x1xf32>
    %26 = tpu.reciprocal %25 : vector<8x1xf32> -> vector<8x1xf32>
    %27 = vector.broadcast %26 : vector<8x1xf32> to vector<8x16xf32>
    %28 = arith.mulf %23, %27 : vector<8x16xf32>
    %cst_16 = arith.constant dense<0.000000e+00> : vector<8x32xf32>
    %29 = tpu.matmul %28, %15, %cst_16 {dimension_numbers = #tpu.dot_dimension_numbers<[1], [0], [0], [1], [0, 0, 1, 1], [], []>} : vector<8x16xf32>, vector<16x32xf32>, vector<8x32xf32> -> vector<8x32xf32>
    %30 = vector.extract_strided_slice %5 {offsets = [0, 32], sizes = [8, 32], strides = [1, 1]} : vector<8x128xf32> to vector<8x32xf32>
    %31 = vector.extract_strided_slice %8 {offsets = [0, 32], sizes = [16, 32], strides = [1, 1]} : vector<16x128xf32> to vector<16x32xf32>
    %32 = vector.extract_strided_slice %9 {offsets = [0, 32], sizes = [16, 32], strides = [1, 1]} : vector<16x128xf32> to vector<16x32xf32>
    %cst_17 = arith.constant dense<0.000000e+00> : vector<8x16xf32>
    %33 = tpu.matmul %30, %31, %cst_17 {dimension_numbers = #tpu.dot_dimension_numbers<[1], [1], [0], [0], [0, 0, 1, 0], [], []>} : vector<8x32xf32>, vector<16x32xf32>, vector<8x16xf32> -> vector<8x16xf32>
    %cst_18 = arith.constant -1.000000e+09 : f32
    %34 = vector.broadcast %cst_18 : f32 to vector<8x16xf32>
    %35 = arith.select %12, %34, %33 : vector<8x16xi1>, vector<8x16xf32>
    %cst_19 = arith.constant dense<0xFF800000> : vector<8xf32>
    %36 = vector.multi_reduction <maximumf>, %35, %cst_19 [1] : vector<8x16xf32> to vector<8xf32>
    %37 = vector.shape_cast %36 : vector<8xf32> to vector<8x1xf32>
    %38 = vector.broadcast %37 : vector<8x1xf32> to vector<8x16xf32>
    %39 = arith.subf %35, %38 : vector<8x16xf32>
    %40 = math.exp %39 : vector<8x16xf32>
    %cst_20 = arith.constant dense<0.000000e+00> : vector<8xf32>
    %41 = vector.multi_reduction <add>, %40, %cst_20 [1] : vector<8x16xf32> to vector<8xf32>
    %42 = vector.shape_cast %41 : vector<8xf32> to vector<8x1xf32>
    %43 = tpu.reciprocal %42 : vector<8x1xf32> -> vector<8x1xf32>
    %44 = vector.broadcast %43 : vector<8x1xf32> to vector<8x16xf32>
    %45 = arith.mulf %40, %44 : vector<8x16xf32>
    %cst_21 = arith.constant dense<0.000000e+00> : vector<8x32xf32>
    %46 = tpu.matmul %45, %32, %cst_21 {dimension_numbers = #tpu.dot_dimension_numbers<[1], [0], [0], [1], [0, 0, 1, 1], [], []>} : vector<8x16xf32>, vector<16x32xf32>, vector<8x32xf32> -> vector<8x32xf32>
    %47 = vector.extract_strided_slice %5 {offsets = [0, 64], sizes = [8, 32], strides = [1, 1]} : vector<8x128xf32> to vector<8x32xf32>
    %48 = vector.extract_strided_slice %8 {offsets = [0, 64], sizes = [16, 32], strides = [1, 1]} : vector<16x128xf32> to vector<16x32xf32>
    %49 = vector.extract_strided_slice %9 {offsets = [0, 64], sizes = [16, 32], strides = [1, 1]} : vector<16x128xf32> to vector<16x32xf32>
    %cst_22 = arith.constant dense<0.000000e+00> : vector<8x16xf32>
    %50 = tpu.matmul %47, %48, %cst_22 {dimension_numbers = #tpu.dot_dimension_numbers<[1], [1], [0], [0], [0, 0, 1, 0], [], []>} : vector<8x32xf32>, vector<16x32xf32>, vector<8x16xf32> -> vector<8x16xf32>
    %cst_23 = arith.constant -1.000000e+09 : f32
    %51 = vector.broadcast %cst_23 : f32 to vector<8x16xf32>
    %52 = arith.select %12, %51, %50 : vector<8x16xi1>, vector<8x16xf32>
    %cst_24 = arith.constant dense<0xFF800000> : vector<8xf32>
    %53 = vector.multi_reduction <maximumf>, %52, %cst_24 [1] : vector<8x16xf32> to vector<8xf32>
    %54 = vector.shape_cast %53 : vector<8xf32> to vector<8x1xf32>
    %55 = vector.broadcast %54 : vector<8x1xf32> to vector<8x16xf32>
    %56 = arith.subf %52, %55 : vector<8x16xf32>
    %57 = math.exp %56 : vector<8x16xf32>
    %cst_25 = arith.constant dense<0.000000e+00> : vector<8xf32>
    %58 = vector.multi_reduction <add>, %57, %cst_25 [1] : vector<8x16xf32> to vector<8xf32>
    %59 = vector.shape_cast %58 : vector<8xf32> to vector<8x1xf32>
    %60 = tpu.reciprocal %59 : vector<8x1xf32> -> vector<8x1xf32>
    %61 = vector.broadcast %60 : vector<8x1xf32> to vector<8x16xf32>
    %62 = arith.mulf %57, %61 : vector<8x16xf32>
    %cst_26 = arith.constant dense<0.000000e+00> : vector<8x32xf32>
    %63 = tpu.matmul %62, %49, %cst_26 {dimension_numbers = #tpu.dot_dimension_numbers<[1], [0], [0], [1], [0, 0, 1, 1], [], []>} : vector<8x16xf32>, vector<16x32xf32>, vector<8x32xf32> -> vector<8x32xf32>
    %64 = vector.extract_strided_slice %5 {offsets = [0, 96], sizes = [8, 32], strides = [1, 1]} : vector<8x128xf32> to vector<8x32xf32>
    %65 = vector.extract_strided_slice %8 {offsets = [0, 96], sizes = [16, 32], strides = [1, 1]} : vector<16x128xf32> to vector<16x32xf32>
    %66 = vector.extract_strided_slice %9 {offsets = [0, 96], sizes = [16, 32], strides = [1, 1]} : vector<16x128xf32> to vector<16x32xf32>
    %cst_27 = arith.constant dense<0.000000e+00> : vector<8x16xf32>
    %67 = tpu.matmul %64, %65, %cst_27 {dimension_numbers = #tpu.dot_dimension_numbers<[1], [1], [0], [0], [0, 0, 1, 0], [], []>} : vector<8x32xf32>, vector<16x32xf32>, vector<8x16xf32> -> vector<8x16xf32>
    %cst_28 = arith.constant -1.000000e+09 : f32
    %68 = vector.broadcast %cst_28 : f32 to vector<8x16xf32>
    %69 = arith.select %12, %68, %67 : vector<8x16xi1>, vector<8x16xf32>
    %cst_29 = arith.constant dense<0xFF800000> : vector<8xf32>
    %70 = vector.multi_reduction <maximumf>, %69, %cst_29 [1] : vector<8x16xf32> to vector<8xf32>
    %71 = vector.shape_cast %70 : vector<8xf32> to vector<8x1xf32>
    %72 = vector.broadcast %71 : vector<8x1xf32> to vector<8x16xf32>
    %73 = arith.subf %69, %72 : vector<8x16xf32>
    %74 = math.exp %73 : vector<8x16xf32>
    %cst_30 = arith.constant dense<0.000000e+00> : vector<8xf32>
    %75 = vector.multi_reduction <add>, %74, %cst_30 [1] : vector<8x16xf32> to vector<8xf32>
    %76 = vector.shape_cast %75 : vector<8xf32> to vector<8x1xf32>
    %77 = tpu.reciprocal %76 : vector<8x1xf32> -> vector<8x1xf32>
    %78 = vector.broadcast %77 : vector<8x1xf32> to vector<8x16xf32>
    %79 = arith.mulf %74, %78 : vector<8x16xf32>
    %cst_31 = arith.constant dense<0.000000e+00> : vector<8x32xf32>
    %80 = tpu.matmul %79, %66, %cst_31 {dimension_numbers = #tpu.dot_dimension_numbers<[1], [0], [0], [1], [0, 0, 1, 1], [], []>} : vector<8x16xf32>, vector<16x32xf32>, vector<8x32xf32> -> vector<8x32xf32>
    %81 = tpu.concatenate %29, %46, %63, %80 in 1 : vector<8x32xf32>, vector<8x32xf32>, vector<8x32xf32>, vector<8x32xf32> -> vector<8x128xf32>
    %c0_32 = arith.constant 0 : index
    %c0_33 = arith.constant 0 : index
    %82 = vector.load %arg5[%c0_32, %c0_33] : memref<128x32xf32, #tpu.memory_space<vmem>>, vector<128x32xf32>
    %cst_34 = arith.constant dense<0.000000e+00> : vector<8x32xf32>
    %83 = tpu.matmul %81, %82, %cst_34 {dimension_numbers = #tpu.dot_dimension_numbers<[1], [0], [0], [1], [0, 0, 1, 1], [], []>} : vector<8x128xf32>, vector<128x32xf32>, vector<8x32xf32> -> vector<8x32xf32>
    %c0_35 = arith.constant 0 : index
    %c0_36 = arith.constant 0 : index
    %84 = vector.load %arg6[%c0_35, %c0_36] : memref<1x32xf32, #tpu.memory_space<vmem>>, vector<1x32xf32>
    %85 = vector.broadcast %84 : vector<1x32xf32> to vector<8x32xf32>
    %86 = arith.addf %83, %85 : vector<8x32xf32>
    %c0_37 = arith.constant 0 : index
    %c0_38 = arith.constant 0 : index
    %c0_39 = arith.constant 0 : index
    %87 = vector.load %arg8[%c0_37, %c0_38, %c0_39] : memref<1x8x32xf32, #tpu.memory_space<vmem>>, vector<1x8x32xf32>
    %88 = vector.shape_cast %87 : vector<1x8x32xf32> to vector<8x32xf32>
    %89 = vector.shape_cast %86 : vector<8x32xf32> to vector<1x8x32xf32>
    tpu.vector_store %arg8[%c0_37, %c0_38, %c0_39], %89 {strides = array<i32>} : memref<1x8x32xf32, #tpu.memory_space<vmem>>, vector<1x8x32xf32>,
    return
  }
  func.func @transform_0(%arg0: i32) -> (i32, i32, i32) {
    %c0_i32 = arith.constant 0 : i32
    %c0_i32_0 = arith.constant 0 : i32
    %c0_i32_1 = arith.constant 0 : i32
    return %arg0, %c0_i32, %c0_i32_0 : i32, i32, i32
  }
  func.func @transform_1(%arg0: i32) -> (i32, i32, i32) {
    %c0_i32 = arith.constant 0 : i32
    %c0_i32_0 = arith.constant 0 : i32
    %c0_i32_1 = arith.constant 0 : i32
    return %arg0, %c0_i32, %c0_i32_0 : i32, i32, i32
  }
  func.func @transform_2(%arg0: i32) -> (i32, i32) {
    %c0_i32 = arith.constant 0 : i32
    %c0_i32_0 = arith.constant 0 : i32
    %c0_i32_1 = arith.constant 0 : i32
    return %c0_i32, %c0_i32_0 : i32, i32
  }
  func.func @transform_3(%arg0: i32) -> (i32, i32) {
    %c0_i32 = arith.constant 0 : i32
    %c0_i32_0 = arith.constant 0 : i32
    %c0_i32_1 = arith.constant 0 : i32
    return %c0_i32, %c0_i32_0 : i32, i32
  }
  func.func @transform_4(%arg0: i32) -> (i32, i32) {
    %c0_i32 = arith.constant 0 : i32
    %c0_i32_0 = arith.constant 0 : i32
    %c0_i32_1 = arith.constant 0 : i32
    return %c0_i32, %c0_i32_0 : i32, i32
  }
  func.func @transform_5(%arg0: i32) -> (i32, i32) {
    %c0_i32 = arith.constant 0 : i32
    %c0_i32_0 = arith.constant 0 : i32
    %c0_i32_1 = arith.constant 0 : i32
    return %c0_i32, %c0_i32_0 : i32, i32
  }
  func.func @transform_6(%arg0: i32) -> (i32, i32) {
    %c0_i32 = arith.constant 0 : i32
    %c0_i32_0 = arith.constant 0 : i32
    %c0_i32_1 = arith.constant 0 : i32
    return %c0_i32, %c0_i32_0 : i32, i32
  }
  func.func @transform_7(%arg0: i32) -> (i32, i32, i32) {
    %c0_i32 = arith.constant 0 : i32
    %c0_i32_0 = arith.constant 0 : i32
    %c0_i32_1 = arith.constant 0 : i32
    return %arg0, %c0_i32, %c0_i32_0 : i32, i32, i32
  }
}

</mosaic_0001>

<bundles_post_ra>
// kernel: tpu_custom_call.1
= control target key start
LH: loop header
LB: loop body
LE: loop exit
PB: predicated region body
PF: predicated region fallthrough
CT: control target
= control target key end

     0   :  { %12 = vsyncpa [#allocation3], 0  ;;  %s2109_s0 = inlined_call_operand.vmem [shape: f32[2,8,32], index: 0, kind: input, shape index: {}]   ;;  %s2110_s1 = inlined_call_operand.vmem [shape: f32[2,16,32], index: 1, kind: input, shape index: {}]   ;;  %s2111_s2 = inlined_call_operand.vmem [shape: f32[32,128], index: 2, kind: input, shape index: {}]   ;;  %s2112_s3 = inlined_call_operand.vmem [shape: f32[32,256], index: 3, kind: input, shape index: {}]   ;;  %s2113_s4 = inlined_call_operand.vmem [shape: f32[128,32], index: 4, kind: input, shape index: {}]   ;;  %s2114_s5 = inlined_call_operand.vmem [shape: f32[1,32], index: 5, kind: input, shape index: {}]   ;;  %s2115_s6 = inlined_call_operand.vmem [shape: s32[8,16], index: 6, kind: input, shape index: {}]   ;;  %s2116_s7 = inlined_call_operand.hbm [shape: f32[2,8,32], index: 7, kind: output, shape index: {}]  }
   0x1   :  { %14 = vsyncpa [#allocation3 + $0x1], 0  ;;  %s1799_s24 = smov 0   ;;  %s1801_s25 = smov 0  }
   0x2   :  { %s1803_s26 = smov 0   ;;  %s1805_s27 = smov 0  }
   0x3 LB: > { %s1820_s28 = sadd.s32 4294967295, %s1750_s27   ;;  %s1350_s29 = sadd.s32 4294967294, %s1750_s27   ;;  %s1750_s27 = sphi %s1805_s27, %s2124_s27   ;;  %s1746_s26 = sphi %s1803_s26, %s2123_s26   ;;  %s1742_s25 = sphi %s1801_s25, %s2122_s25   ;;  %s1738_s24 = sphi %s1799_s24, %s2121_s24  }
   0x4   : > { %s1824_s30 = sadd.s32 1, %s1750_s27   ;;  %s184_s8 = sadd.s32 1, %s1746_s26 }
   0x5   : > { %s181_s9 = ssub.s32 %s1750_s27, %s1824_s30  ;;  %p194_p0 = scmp.ne.s32.totalorder %s1746_s26, %s1742_s25 }
   0x6   : > { %p182_p1 = scmp.eq.s32.totalorder %s181_s9, 0  ;;  %p195_p2 = scmp.eq.s32.totalorder %s1820_s28, 1 }
   0x7   : > { %p200_p3 = scmp.ne.s32.totalorder %s1742_s25, %s1738_s24  ;;  %p201_p4 = scmp.eq.s32.totalorder %s1350_s29, 1 }
   0x8   : > { %s1835_s10 = scalar_select %p182_p1, %s1746_s26, %s184_s8  }
   0x9   : > { %p1837_p5 = por %p195_p2, %p194_p0  ;;  %p1841_p6 = por %p201_p4, %p200_p3 }
   0xa   : > { %p1353_p7 = scmp.ge.s32.totalorder %s1750_s27, 1  ;;  %p249_p8 = scmp.lt.s32.totalorder %s1750_s27, 3 }
   0xc   : > { %p250_p9 = pnand %p1353_p7, %p249_p8 }
   0xd   : > { %v297_v0 = vld [vmem:[%s2111_s2] sm:$0xff] (!%p250_p9)  ;;  %v298_v1 = vld [vmem:[%s2111_s2 + $0x8] sm:$0xff] (!%p250_p9)  ;;  %v299_v2 = vld [vmem:[%s2111_s2 + $0x10] sm:$0xff] (!%p250_p9)  ;;  %v1752_v3 = vmov (!%p250_p9), 0.0|0.0   ;;  %vm1753_vm0 = vmmov (!%p250_p9), 0   ;;  %v1754_v6 = vmov (!%p250_p9), 0.0  }
   0xe   : > { %253 = sbr.rel (%p250_p9) target bundleno = 2947 (0xb83), region = 48  ;;  %1531 = vmatprep.subr.bf16.mxu0 (!%p250_p9), %v1752_v3  ;;  %v1532_v4 = vpack.c.bf16 (!%p250_p9), %v298_v1, %v297_v0  ;;  %v300_v5 = vld [vmem:[%s2111_s2 + $0x18] sm:$0xff] (!%p250_p9)  ;;  %1437 = vmatprep.mubr.msk.f32.mxu0 (!%p250_p9), %vm1753_vm0, %v1754_v6  ;;  %p285_p10 = scmp.lt.s32.totalorder (!%p250_p9), %s1820_s28, 1  ;;  %v376_v7 = vld [vmem:[%s2112_s3 + $0x8] sm:$0xff] (!%p250_p9)  ;;  %v375_v11 = vld [vmem:[%s2112_s3] sm:$0xff] (!%p250_p9)  ;;  %vm301_vm1 = vcmask (!%p250_p9), 261120  }
   0xf   : > { %v378_v8 = vld [vmem:[%s2112_s3 + $0x18] sm:$0xff] (!%p250_p9)  ;;  %1556 = vmatprep.subr.bf16.mxu1 (!%p250_p9), %v1752_v3  ;;  %1465 = vmatprep.mubr.msk.f32.mxu1 (!%p250_p9), %vm1753_vm0, %v1754_v6  ;;  %v1535_v9 = vpack.c.bf16 (!%p250_p9), %v300_v5, %v299_v2  ;;  %v377_v12 = vld [vmem:[%s2112_s3 + $0x10] sm:$0xff] (!%p250_p9)  ;;  %v380_v13 = vld [vmem:[%s2112_s3 + $0x28] sm:$0xff] (!%p250_p9)  ;;  %vm548_vm4 = vcmask (!%p250_p9), 130048   ;;  %s1756_s21 = smov (!%p250_p9), 64   ;;  %s1757_s22 = smov (!%p250_p9), 32  }
  0x10   : > { %1533 = vmatpush3.bf16.msra.mxu0 (!%p250_p9), %v1532_v4  ;;  %v1537_v10 = vpack.c.bf16 (!%p250_p9), %v378_v8, %v376_v7  ;;  %v382_v14 = vld [vmem:[%s2112_s3 + $0x38] sm:$0xff] (!%p250_p9)  ;;  %v1539_v16 = vpack.c.bf16 (!%p250_p9), %v377_v12, %v375_v11  ;;  %v379_v18 = vld [vmem:[%s2112_s3 + $0x20] sm:$0xff] (!%p250_p9)  ;;  %v381_v19 = vld [vmem:[%s2112_s3 + $0x30] sm:$0xff] (!%p250_p9)  ;;  %vm1167_vm5 = vcmask (!%p250_p9), 523264   ;;  %vm1169_vm6 = vcmask (!%p250_p9), 785408  }
  0x11   : > { %1534 = vmatprep.subr.bf16.mxu0 (!%p250_p9), %v1752_v3  ;;  %v1541_v17 = vpack.c.bf16 (!%p250_p9), %v382_v14, %v380_v13  ;;  %v1543_v20 = vpack.c.bf16 (!%p250_p9), %v381_v19, %v379_v18  ;;  %vm1910_vm2 = vmpackc.low (!%p250_p9), %vm301_vm1, %vm301_vm1  ;;  %v1933_v34 = vld [vmem:[%s2115_s6] sm:$0xff] (!%p250_p9) }
  0x12   : > { %vm467_vm3 = vcmp.eq.s32.totalorder (!%p250_p9), %v1933_v34, 0 }
  0x14   : > { %1536 = vmatpush3.bf16.msra.mxu0 (!%p250_p9), %v1535_v9 }
  0x15   : > { %s286_s8 = scalar_select %p285_p10, %s1820_s28, 1  ;;  %1538 = vmatprep.subr.bf16.mxu0 %v1537_v10 }
  0x17   : > { %s1355_s16 = sshll.u32 %s286_s8, 3  ;;  %s1382_s15 = sshll.u32 %s286_s8, 4 }
  0x18   : > { %s288_s23 = scalar_lea.vmem %s2109_s0, %s1355_s16  ;;  %s293_s18 = scalar_lea.vmem %s2110_s1, %s1382_s15 }
  0x19   : > { %v294_v15 = vld [vmem:[%s288_s23] sm:$0xff]  ;;  %v296_v22 = vld [vmem:[%s293_s18 + $0x8] sm:$0xff]  ;;  %s1755_s8 = smov 96   ;;  %s282_s16 = sand.u32 1, %s1742_s25  }
  0x1a   : > { %1438 = vmatmul.mubr.msk.f32.vlgmr.msra.gmra.mrb[0].mxu0 %vm301_vm1, %v294_v15  ;;  %v295_v21 = vld [vmem:[%s293_s18] sm:$0xff]  ;;  %s1354_s17 = sshll.u32 %s282_s16, 3  ;;  %s1266_s9 = scalar_lea.sflag [#allocation3], %s282_s16 }
  0x1b   : > { %1540 = vmatpush1.bf16.msra.mxu0 %v1539_v16  ;;  %453 = vmatprep.mubr.f32.mxu0 %v1754_v6  ;;  %s284_s20 = scalar_lea.vmem [#allocation2], %s1354_s17 }
  0x1c   : > { %1542 = vmatprep.subr.bf16.mxu0 %v1541_v17 }
  0x1f   : > { %1544 = vmatpush1.bf16.msra.mxu0 %v1543_v20 }
  0x20   : > { %1545 = vmatprep.subr.bf16.mxu0 %v1752_v3 }
  0x22   : > { %1359 = vmatmul.mubr.msk.f32.vlgmr.msra.gmra.mrb[2].mxu0 %vm301_vm1, %v295_v21 }
  0x23   : > { %459 = vmatprep.mubr.f32.mxu0 %v1754_v6 }
  0x26   : > { %1360 = vmatmul.mubr.msk.f32.gmra.mrb[4].mxu0 %vm301_vm1, %v296_v22 }
  0x27   : > { %1444 = vmatprep.mubr.msk.f32.mxu0 %vm1753_vm0, %v1754_v6 }
  0xed   : > { %v1906_v23 = vpop.f32.mrb[0].mxu0 }
  0xee   : > { %v1439_v24 = vpop.f32.mrb[1].mxu0 }
  0xf5   : > { %v455_v25 = vpop.f32.mrb[2].mxu0 }
  0xf6   : > { %v457_v26 = vpop.f32.mrb[3].mxu0 }
  0xf9   : > { %v461_v27 = vpop.f32.mrb[4].mxu0 }
  0xfa   : > { %v1546_v29 = vpack.c.bf16 %v461_v27, %v455_v25  ;;  %v463_v30 = vpop.f32.mrb[5].mxu0  ;;  %v1914_v31 = vpack.i.bf16 %v461_v27, %v455_v25 }
  0xfb   : > { %v1550_v32 = vpack.c.bf16 %v463_v30, %v457_v26  ;;  %v1916_v33 = vpack.i.bf16 %v463_v30, %v457_v26 }
  0xfc   : > { %1643 = vrot.lane.b32.xlu1 %v1914_v31, %s1755_s8  ;;  %1548 = vmatpush3.bf16.xpose.msk.msra.mxu0 %vm1910_vm2, %v1546_v29 }
  0xfd   : > { %1549 = vmatprep.subr.bf16.mxu0 %v1752_v3 }
 0x100   : > { %633 = vrot.lane.b32.xlu1 %v1906_v23, %s1755_s8 }
 0x103   : > { %1445 = vmatmul.mubr.msk.f32.vlgmr.msra.gmra.mrb[6].mxu0 %vm301_vm1, %v1906_v23 }
 0x104   : > { %1551 = vmatpush3.bf16.msra.mxu0 %v1550_v32  ;;  %1451 = vmatprep.mubr.msk.f32.mxu0 %vm1753_vm0, %v1754_v6 }
 0x105   : > { %1552 = vmatprep.subr.bf16.mxu0 %v1752_v3 }
 0x16e   : > { %v1644_v45 = vpop.permute.xlu1 %1643 }
 0x16f   : > { %v1646_v46 = vunpack.i.h.bf16 %v1644_v45  ;;  %v1645_v47 = vunpack.i.l.bf16 %v1644_v45 }
 0x171   : > { %v1553_v50 = vpack.c.bf16 %v1646_v46, %v1645_v47 }
 0x172   : > { %v634_v51 = vpop.permute.xlu1 %633 }
 0x1d6   : > { %v543_v35 = vpop.f32.mrb[6].mxu0 }
 0x1d7   : > { %v547_v36 = vsel %vm467_vm3, -1e+09, %v543_v35  ;;  %v1446_v37 = vpop.f32.mrb[7].mxu0 }
 0x1d8   : > { %v549_v38 = vsel %vm548_vm4, %v547_v36, -inf }
 0x1d9   : > { %550 = vmax.xlane.f32.xlu0 %v549_v38 }
 0x266   : > { %v551_v39 = vpop.xlane.xlu0 %550 }
 0x267   : > { %v552_v40 = vsub.f32 %v547_v36, %v551_v39 }
 0x269   : > { %v553_v41 = vmul.f32 1.442695, %v552_v40 }
 0x26b   : > { %1672 = vpow2.f32 %v553_v41 }
 0x275   : > { %v1673_v42 = vpop.eup %1672 }
 0x276   : > { %v555_v43 = vsel %vm548_vm4, %v1673_v42, 0.0 }
 0x277   : > { %556 = vadd.xlane.f32.xlu0 %v555_v43 }
 0x304   : > { %v557_v44 = vpop.xlane.xlu0 %556 }
 0x305   : > { %1674 = vrcp.f32 %v557_v44 }
 0x30f   : > { %v1675_v48 = vpop.eup %1674 }
 0x310   : > { %v559_v49 = vmul.f32 %v1675_v48, %v1673_v42 }
 0x312   : > { %1452 = vmatmul.mubr.msk.f32.vlgmr.msra.gmra.mrb[8].mxu0 %vm548_vm4, %v559_v49 }
 0x313   : > { %1555 = vmatpush3.bf16.xpose.msk.msra.mxu0 %vm1910_vm2, %v1553_v50  ;;  %1458 = vmatprep.mubr.msk.f32.mxu0 %vm1753_vm0, %v1754_v6 }
 0x314   : > { %1563 = vmatprep.subr.bf16.mxu0 %v1752_v3 }
 0x31a   : > { %1459 = vmatmul.mubr.msk.f32.vlgmr.msra.gmra.mrb[10].mxu0 %vm301_vm1, %v634_v51 }
 0x31b   : > { %1479 = vmatprep.mubr.msk.f32.mxu0 %vm1753_vm0, %v1754_v6 }
 0x3e5   : > { %v1949_v52 = vpop.f32.mrb[8].mxu0 }
 0x3e6   : > { %v1453_v53 = vpop.f32.mrb[9].mxu0 }
 0x3ed   : > { %v711_v54 = vpop.f32.mrb[10].mxu0 }
 0x3ee   : > { %v715_v55 = vsel %vm467_vm3, -1e+09, %v711_v54  ;;  %v1460_v56 = vpop.f32.mrb[11].mxu0 }
 0x3ef   : > { %v716_v57 = vsel %vm548_vm4, %v715_v55, -inf  ;;  %v1172_v56 = vld [vmem:[%s2113_s4 + $0x8] sm:$0xff] }
 0x3f0   : > { %717 = vmax.xlane.f32.xlu0 %v716_v57  ;;  %v1173_v57 = vld [vmem:[%s2113_s4 + $0x10] sm:$0xff] }
 0x406   : > { %1648 = vrot.lane.b32.xlu0 %v1916_v33, %s1755_s8 }
 0x40a   : > { %1653 = vrot.lane.b32.xlu0 %v1914_v31, %s1756_s21 }
 0x40e   : > { %808 = vrot.lane.b32.xlu0 %v1906_v23, %s1756_s21 }
 0x47d   : > { %v718_v58 = vpop.xlane.xlu0 %717 }
 0x47e   : > { %v719_v59 = vsub.f32 %v715_v55, %v718_v58  ;;  %v1171_v55 = vld [vmem:[%s2113_s4] sm:$0xff] }
 0x47f   : > { %v1574_v58 = vpack.c.bf16 %v1172_v56, %v1171_v55 }
 0x480   : > { %v720_v60 = vmul.f32 1.442695, %v719_v59  ;;  %v1174_v59 = vld [vmem:[%s2113_s4 + $0x18] sm:$0xff] }
 0x481   : > { %v1649_v61 = vpop.permute.xlu0 %1648 }
 0x482   : > { %1676 = vpow2.f32 %v720_v60  ;;  %v1651_v62 = vunpack.i.h.bf16 %v1649_v61  ;;  %v1650_v63 = vunpack.i.l.bf16 %v1649_v61  ;;  %v1577_v60 = vpack.c.bf16 %v1174_v59, %v1173_v57  ;;  %v1176_v61 = vld [vmem:[%s2113_s4 + $0x28] sm:$0xff] }
 0x484   : > { %v1557_v0 = vpack.c.bf16 %v1651_v62, %v1650_v63  ;;  %v1177_v63 = vld [vmem:[%s2113_s4 + $0x30] sm:$0xff] }
 0x485   : > { %v1654_v9 = vpop.permute.xlu0 %1653 }
 0x486   : > { %1558 = vmatpush3.bf16.msra.mxu1 %v1557_v0  ;;  %v1656_v11 = vunpack.i.h.bf16 %v1654_v9  ;;  %v1655_v12 = vunpack.i.l.bf16 %v1654_v9  ;;  %v1178_v0 = vld [vmem:[%s2113_s4 + $0x38] sm:$0xff] }
 0x487   : > { %1559 = vmatprep.subr.bf16.mxu1 %v1752_v3 }
 0x488   : > { %v1560_v15 = vpack.c.bf16 %v1656_v11, %v1655_v12  ;;  %v1184_v11 = vld [vmem:[%s2113_s4 + $0x68] sm:$0xff] }
 0x489   : > { %v809_v16 = vpop.permute.xlu0 %808 }
 0x48c   : > { %v1677_v1 = vpop.eup %1676 }
 0x48d   : > { %v722_v2 = vsel %vm548_vm4, %v1677_v1, 0.0 }
 0x48e   : > { %723 = vadd.xlane.f32.xlu1 %v722_v2  ;;  %v1179_v2 = vld [vmem:[%s2113_s4 + $0x40] sm:$0xff] }
 0x49f   : > { %1658 = vrot.lane.b32.xlu1 %v1916_v33, %s1756_s21 }
 0x4a3   : > { %1663 = vrot.lane.b32.xlu1 %v1914_v31, %s1757_s22 }
 0x51b   : > { %v724_v4 = vpop.xlane.xlu1 %723 }
 0x51c   : > { %1678 = vrcp.f32 %v724_v4  ;;  %v1180_v4 = vld [vmem:[%s2113_s4 + $0x48] sm:$0xff] }
 0x51f   : > { %v1659_v5 = vpop.permute.xlu1 %1658 }
 0x520   : > { %v1661_v7 = vunpack.i.h.bf16 %v1659_v5  ;;  %v1660_v8 = vunpack.i.l.bf16 %v1659_v5  ;;  %v1586_v5 = vpack.c.bf16 %v1180_v4, %v1179_v2 }
 0x522   : > { %v1564_v10 = vpack.c.bf16 %v1661_v7, %v1660_v8  ;;  %v1181_v7 = vld [vmem:[%s2113_s4 + $0x50] sm:$0xff]  ;;  %v1182_v8 = vld [vmem:[%s2113_s4 + $0x58] sm:$0xff] }
 0x523   : > { %v1664_v30 = vpop.permute.xlu1 %1663  ;;  %v1589_v9 = vpack.c.bf16 %v1182_v8, %v1181_v7 }
 0x524   : > { %1565 = vmatpush3.bf16.msra.mxu0 %v1564_v10  ;;  %v1666_v32 = vunpack.i.h.bf16 %v1664_v30  ;;  %v1665_v35 = vunpack.i.l.bf16 %v1664_v30  ;;  %v1183_v10 = vld [vmem:[%s2113_s4 + $0x60] sm:$0xff] }
 0x525   : > { %1566 = vmatprep.subr.bf16.mxu0 %v1752_v3  ;;  %v1592_v12 = vpack.c.bf16 %v1184_v11, %v1183_v10 }
 0x526   : > { %v1679_v13 = vpop.eup %1678  ;;  %v1567_v38 = vpack.c.bf16 %v1666_v32, %v1665_v35 }
 0x527   : > { %v726_v14 = vmul.f32 %v1679_v13, %v1677_v1  ;;  %v1583_v1 = vpack.c.bf16 %v1178_v0, %v1177_v63  ;;  %v1185_v13 = vld [vmem:[%s2113_s4 + $0x70] sm:$0xff] }
 0x529   : > { %1466 = vmatmul.mubr.msk.f32.vlgmr.msra.gmra.mrb[0].mxu1 %vm548_vm4, %v726_v14  ;;  %v1186_v14 = vld [vmem:[%s2113_s4 + $0x78] sm:$0xff] }
 0x52a   : > { %1562 = vmatpush3.bf16.xpose.msk.msra.mxu1 %vm1910_vm2, %v1560_v15  ;;  %1472 = vmatprep.mubr.msk.f32.mxu1 %vm1753_vm0, %v1754_v6  ;;  %v1595_v15 = vpack.c.bf16 %v1186_v14, %v1185_v13 }
 0x52b   : > { %1570 = vmatprep.subr.bf16.mxu1 %v1752_v3 }
 0x531   : > { %1473 = vmatmul.mubr.msk.f32.vlgmr.msra.gmra.mrb[2].mxu1 %vm301_vm1, %v809_v16 }
 0x532   : > { %1493 = vmatprep.mubr.msk.f32.mxu1 %vm1753_vm0, %v1754_v6 }
 0x5fc   : > { %v804_v17 = vpop.f32.mrb[0].mxu1 }
 0x5fd   : > { %v1467_v18 = vpop.f32.mrb[1].mxu1 }
 0x604   : > { %v886_v19 = vpop.f32.mrb[2].mxu1 }
 0x605   : > { %v890_v20 = vsel %vm467_vm3, -1e+09, %v886_v19  ;;  %v1474_v21 = vpop.f32.mrb[3].mxu1 }
 0x606   : > { %v891_v22 = vsel %vm548_vm4, %v890_v20, -inf }
 0x607   : > { %892 = vmax.xlane.f32.xlu0 %v891_v22 }
 0x694   : > { %v893_v24 = vpop.xlane.xlu0 %892 }
 0x695   : > { %v894_v25 = vsub.f32 %v890_v20, %v893_v24 }
 0x697   : > { %v895_v26 = vmul.f32 1.442695, %v894_v25 }
 0x699   : > { %1680 = vpow2.f32 %v895_v26 }
 0x6a3   : > { %v1681_v27 = vpop.eup %1680 }
 0x6a4   : > { %v897_v29 = vsel %vm548_vm4, %v1681_v27, 0.0 }
 0x6a5   : > { %898 = vadd.xlane.f32.xlu1 %v897_v29 }
 0x6b6   : > { %981 = vrot.lane.b32.xlu1 %v1906_v23, %s1757_s22 }
 0x732   : > { %v899_v31 = vpop.xlane.xlu1 %898 }
 0x733   : > { %1682 = vrcp.f32 %v899_v31 }
 0x736   : > { %v982_v39 = vpop.permute.xlu1 %981 }
 0x73d   : > { %v1683_v36 = vpop.eup %1682 }
 0x73e   : > { %v901_v37 = vmul.f32 %v1683_v36, %v1681_v27 }
 0x740   : > { %1480 = vmatmul.mubr.msk.f32.vlgmr.msra.gmra.mrb[12].mxu0 %vm548_vm4, %v901_v37 }
 0x741   : > { %1569 = vmatpush3.bf16.xpose.msk.msra.mxu0 %vm1910_vm2, %v1567_v38  ;;  %1486 = vmatprep.mubr.msk.f32.mxu0 %vm1753_vm0, %v1754_v6 }
 0x748   : > { %1487 = vmatmul.mubr.msk.f32.vlgmr.msra.gmra.mrb[14].mxu0 %vm301_vm1, %v982_v39 }
 0x813   : > { %v977_v23 = vpop.f32.mrb[12].mxu0 }
 0x814   : > { %v1481_v40 = vpop.f32.mrb[13].mxu0 }
 0x81b   : > { %v1059_v41 = vpop.f32.mrb[14].mxu0 }
 0x81c   : > { %v1063_v42 = vsel %vm467_vm3, -1e+09, %v1059_v41  ;;  %v1488_v43 = vpop.f32.mrb[15].mxu0 }
 0x81d   : > { %v1064_v44 = vsel %vm548_vm4, %v1063_v42, -inf }
 0x81e   : > { %1065 = vmax.xlane.f32.xlu0 %v1064_v44 }
 0x834   : > { %1668 = vrot.lane.b32.xlu0 %v1916_v33, %s1757_s22 }
 0x838   : > { %1155 = vrot.lane.b32.xlu0 %v804_v17, %s1757_s22 }
 0x83c   : > { %1159 = vrot.lane.b32.xlu0 %v977_v23, %s1756_s21  ;;  %s1279_s21 = sshll.u32 %s284_s20, 4  ;;  %s2068_s21 = int_to_ptr.vmem [resolvable:$true] %s1279_s21 }
 0x83d   : > { %s1688_s13 = scalar_lea.vmem %s2068_s21, 128 }
 0x83e   : > { %p1689_p11 = scmp.ne.s32.totalorder %s2068_s21, %s1688_s13 }
 0x840   : > { %p1690_p12 = pnand %p1689_p11, %p1837_p5 }
 0x842   : > { %p1691_p13 = pneg %p1690_p12 }
 0x8ab   : > { %v1066_v28 = vpop.xlane.xlu0 %1065 }
 0x8ac   : > { %v1067_v45 = vsub.f32 %v1063_v42, %v1066_v28 }
 0x8ae   : > { %v1068_v46 = vmul.f32 1.442695, %v1067_v45 }
 0x8af   : > { %v1669_v47 = vpop.permute.xlu0 %1668 }
 0x8b0   : > { %1684 = vpow2.f32 %v1068_v46  ;;  %v1671_v48 = vunpack.i.h.bf16 %v1669_v47  ;;  %v1670_v49 = vunpack.i.l.bf16 %v1669_v47 }
 0x8b2   : > { %v1571_v34 = vpack.c.bf16 %v1671_v48, %v1670_v49 }
 0x8b3   : > { %v1156_v18 = vpop.permute.xlu0 %1155 }
 0x8b4   : > { %1572 = vmatpush3.bf16.msra.mxu1 %v1571_v34  ;;  %v1166_v20 = vsel %vm301_vm1, %v1949_v52, %v1156_v18 }
 0x8b5   : > { %1573 = vmatprep.subr.bf16.mxu1 %v1752_v3 }
 0x8b7   : > { %v1160_v19 = vpop.permute.xlu0 %1159 }
 0x8b8   : > { %v1168_v21 = vsel %vm1167_vm5, %v1166_v20, %v1160_v19 }
 0x8ba   : > { %v1685_v50 = vpop.eup %1684 }
 0x8bb   : > { %v1070_v51 = vsel %vm548_vm4, %v1685_v50, 0.0 }
 0x8bc   : > { %1071 = vadd.xlane.f32.xlu1 %v1070_v51 }
 0x949   : > { %v1072_v33 = vpop.xlane.xlu1 %1071 }
 0x94a   : > { %1686 = vrcp.f32 %v1072_v33 }
 0x954   : > { %v1687_v53 = vpop.eup %1686 }
 0x955   : > { %v1074_v54 = vmul.f32 %v1687_v53, %v1685_v50 }
 0x957   : > { %1494 = vmatmul.mubr.msk.f32.vlgmr.msra.gmra.mrb[4].mxu1 %vm548_vm4, %v1074_v54 }
 0x958   : > { %1528 = vmatprep.mubr.msk.f32.mxu1 %vm1753_vm0, %v1754_v6  ;;  %1575 = vmatpush3.bf16.msra.mxu1 %v1574_v58  ;;  %v1175_v6 = vld [vmem:[%s2113_s4 + $0x20] sm:$0xff] }
 0x959   : > { %1576 = vmatprep.subr.bf16.mxu1 %v1752_v3  ;;  %v1580_v62 = vpack.c.bf16 %v1176_v61, %v1175_v6 }
 0x95c   : > { %1578 = vmatpush3.bf16.msra.mxu1 %v1577_v60 }
 0x95d   : > { %1579 = vmatprep.subr.bf16.mxu1 %v1752_v3 }
 0x960   : > { %1581 = vmatpush3.bf16.msra.mxu1 %v1580_v62 }
 0x961   : > { %1582 = vmatprep.subr.bf16.mxu1 %v1752_v3 }
 0x964   : > { %1584 = vmatpush3.bf16.msra.mxu1 %v1583_v1 }
 0x965   : > { %1585 = vmatprep.subr.bf16.mxu1 %v1752_v3 }
 0x968   : > { %1587 = vmatpush3.bf16.msra.mxu1 %v1586_v5 }
 0x969   : > { %1588 = vmatprep.subr.bf16.mxu1 %v1752_v3 }
 0x96c   : > { %1590 = vmatpush3.bf16.msra.mxu1 %v1589_v9 }
 0x96d   : > { %1591 = vmatprep.subr.bf16.mxu1 %v1752_v3 }
 0x970   : > { %1593 = vmatpush3.bf16.msra.mxu1 %v1592_v12 }
 0x971   : > { %1594 = vmatprep.subr.bf16.mxu1 %v1752_v3  ;;  %v1377_v3 = vld [vmem:[%s2114_s5] ss:$0 sm:$0xff] }
 0x974   : > { %1596 = vmatpush3.bf16.msra.mxu1 %v1595_v15 }
 0xa2a   : > { %v1150_v16 = vpop.f32.mrb[4].mxu1 }
 0xa2b   : > { %1163 = vrot.lane.b32.xlu0 %v1150_v16, %s1755_s8  ;;  %v1495_v17 = vpop.f32.mrb[5].mxu1  ;;  %s1379_s8 = sshll.u32 %s1820_s28, 7  ;;  %s1758_s28 = smov [#allocation2]  }
 0xa2c   : > { %s2066_s29 = scalar_lea.hbm %s2116_s7, %s1379_s8  ;;  %s1692_s14 = sshll.u32 %s1758_s28, 4  ;;  %s1693_s14 = int_to_ptr.vmem [resolvable:$false] %s1692_s14 }
 0xa2d   : > { %s1694_s15 = scalar_lea.vmem %s1693_s14, 256  ;;  %p1695_p0 = scmp.lt.s32.totalorder %s2068_s21, %s1693_s14 }
 0xa2e   : > { %p1696_p1 = scmp.lt.s32.totalorder %s1694_s15, %s1688_s13 }
 0xa30   : > { %p1697_p2 = por %p1696_p1, %p1695_p0 }
 0xa32   : > { %p1698_p3 = pnand %p1697_p2, %p1691_p13 }
 0xa9d   : > { %v1164_v22 = vpop.permute.xlu0 %1163 }
 0xa9e   : > { %v1170_v24 = vsel %vm1169_vm6, %v1168_v21, %v1164_v22 }
 0xa9f   : > { %1529 = vmatmul.mubr.f32.vlgmr.msra.gmra.mrb[6].mxu1 %v1170_v24 }
 0xb72   : > { %v1260_v25 = vpop.f32.mrb[6].mxu1 }
 0xb73   : > { %v1261_v26 = vadd.f32 %v1377_v3, %v1260_v25  ;;  %v1530_v27 = vpop.f32.mrb[7].mxu1 }
 0xb75   : > { %1264 = vst.msk [vmem:[%s284_s20] sm:$0xff] %vm301_vm1, %v1261_v26 }
 0xb76   : > { %1701 = shalt.err (!%p1698_p3)
}
 0xb77   : > { %s1702_s16 = scalar_lea.hbm %s2066_s29, 128  ;;  %s1706_s19 = scalar_lea.hbm %s2116_s7, 256 }
 0xb78   : > { %p1703_p4 = scmp.ne.s32.totalorder %s2066_s29, %s1702_s16  ;;  %p1707_p9 = scmp.lt.u32.totalorder %s2066_s29, %s2116_s7 }
 0xb79   : > { %p1708_p10 = scmp.lt.u32.totalorder %s1706_s19, %s1702_s16  ;;  %p1710_p12 = scmp.lt.u32.totalorder %s1702_s16, %s2066_s29 }
 0xb7a   : > { %p1704_p7 = pnand %p1703_p4, %p1837_p5 }
 0xb7b   : > { %p1709_p11 = por %p1708_p10, %p1707_p9 }
 0xb7c   : > { %p1705_p8 = pneg %p1704_p7 }
 0xb7d   : > { %p1711_p13 = por %p1710_p12, %p1709_p11 }
 0xb7f   : > { %p1712_p0 = pnand %p1711_p13, %p1705_p8 }
 0xb81   : > { %1715 = shalt.err (!%p1712_p0)
}
 0xb82   : > { %1597 = dma.vmem_to_hbm [thread:$0]  (%p1837_p5), %s2068_s21, 128, %s2066_s29, %s1266_s9  }
 0xb83 PF: > { %p1603_p1 = scmp.ge.s32.totalorder %s1750_s27, 2  ;;  %s1291_s22 = sand.u32 1, %s1738_s24  }
 0xb84   : > { %s1292_s23 = scalar_lea.sflag [#allocation3], %s1291_s22 }
 0xb85   : > { %p1600_p2 = pnand %p1603_p1, %p1841_p6 }
 0xb87   : > { %1733 = dma.done.wait (!%p1600_p2), %s1292_s23, 128  }
 0xb88   : > { %1735 = vsyncadd (!%p1600_p2), %s1292_s23, 4294967168  ;;  %p17_p3 = scmp.ge.s32.totalorder %s1824_s30, 4   ;;  %s2121_s24 = smov %s1742_s25 }
 0xb89   : > { %s2122_s25 = smov %s1746_s26  ;;  %s2123_s26 = smov %s1835_s10 }
 0xb8a   : > { %s2124_s27 = smov %s1824_s30  ;;  %19 = sbr.rel (!%p17_p3) target bundleno = 3 (0x3), region = 86 }
 0xb91   :  { %1297 = vsyncpa [#allocation3], 1 }
 0xb92   :  { %1299 = vsyncpa [#allocation3 + $0x1], 1 }

</bundles_post_ra>
